<compile_context>
chip_gen: v7x
topology: tpu7x:2x2x1
jax: 0.10.0
libtpu: 0.0.40
codegen_flags: <defaults>
</compile_context>

<pallas_src>
import functools
import math

import jax
import jax.numpy as jnp
from jax.experimental import pallas as pl
from jax.experimental.pallas import tpu as pltpu

_LANE = 128      # lane width  -> last (store) dim padded to multiples of this
_SUBLANE = 8     # sublane     -> batch tile rounded to multiples of this


def _round_up(n, m):
    return ((n + m - 1) // m) * m


# ---------------------------------------------------------------------------
# One-time prep kernel: gated_weight = weight * hard-concrete eval gate.
# Tiled 2D grid -> robust at any (out_features, in_features).
# ---------------------------------------------------------------------------
def _gate_weight_kernel(w_ref, la_ref, o_ref, *, gamma, zeta):
    gates = jax.nn.sigmoid(la_ref[...]) * (zeta - gamma) + gamma
    gates = jnp.clip(gates, 0.0, 1.0)
    o_ref[...] = (w_ref[...] * gates).astype(o_ref.dtype)


def gate_weight(weight, log_alpha, *, gamma, zeta):
    out_f, in_f = weight.shape
    bm = min(_round_up(out_f, _SUBLANE), 512)
    bn = min(_round_up(in_f, _LANE), 512)
    spec = pl.BlockSpec((bm, bn), lambda i, j: (i, j))
    return pl.pallas_call(
        functools.partial(_gate_weight_kernel, gamma=gamma, zeta=zeta),
        out_shape=jax.ShapeDtypeStruct(weight.shape, weight.dtype),
        grid=(pl.cdiv(out_f, bm), pl.cdiv(in_f, bn)),
        in_specs=[spec, spec],
        out_specs=spec,
        compiler_params=pltpu.CompilerParams(
            dimension_semantics=("parallel", "parallel")),
    )(weight, log_alpha)


# ---------------------------------------------------------------------------
# Fused forward kernel: all layers, skip-connections via split weight slabs.
# Matmul operands in `compute_dtype` (bf16 by default), f32 accumulation,
# bias + ReLU in f32, h never written to HBM.
# ---------------------------------------------------------------------------
def _fused_mlp_kernel(*refs, n_layers, compute_dtype):
    # refs = [x, w0, b0, (wx_i, wh_i, b_i for i=1..n_layers-1), o_ref]
    x_ref = refs[0]
    o_ref = refs[-1]
    x = x_ref[...].astype(compute_dtype)                      # (TB, input_dim)

    # ----- layer 0: h = relu(x @ W0 + b0) -----
    h = jnp.dot(x, refs[1][...], preferred_element_type=jnp.float32)
    h = jnp.maximum(h + refs[2][...], 0.0)

    # ----- layers 1 .. n_layers-1: y = x @ Wx + h @ Wh + b -----
    idx = 3
    for i in range(1, n_layers):
        wx = refs[idx][...]
        wh = refs[idx + 1][...]
        b = refs[idx + 2][...]
        idx += 3
        y = jnp.dot(x, wx, preferred_element_type=jnp.float32)
        y = y + jnp.dot(h.astype(compute_dtype), wh,
                        preferred_element_type=jnp.float32)
        y = y + b
        h = jnp.maximum(y, 0.0) if i < n_layers - 1 else y    # no relu on last

    o_ref[...] = h.astype(o_ref.dtype)


# ---------------------------------------------------------------------------
# Parameter initialization (matches nn.Linear / L0Linear init shapes & ranges)
# ---------------------------------------------------------------------------
def init_l0_linear_params(key, in_features, out_features):
    kw, kb, ka = jax.random.split(key, 3)
    bound = 1.0 / math.sqrt(in_features)
    weight = jax.random.uniform(
        kw, (out_features, in_features), jnp.float32, -bound, bound)
    bias = jax.random.uniform(kb, (out_features,), jnp.float32, -bound, bound)
    log_alpha = jax.random.normal(
        ka, (out_features, in_features), jnp.float32) * 0.01
    return {"weight": weight, "bias": bias, "log_alpha": log_alpha}


def init_mlp_with_skips(key, input_dim, hidden_dims, output_dim):
    dims_in = [input_dim]
    dims_out = [hidden_dims[0]]
    for i in range(1, len(hidden_dims)):
        dims_in.append(input_dim + hidden_dims[i - 1])
        dims_out.append(hidden_dims[i])
    dims_in.append(input_dim + hidden_dims[-1])
    dims_out.append(output_dim)
    keys = jax.random.split(key, len(dims_in))
    return [init_l0_linear_params(k, i, o)
            for k, i, o in zip(keys, dims_in, dims_out)]


# ---------------------------------------------------------------------------
# One-time parameter prep: gate (Pallas kernel), split skip slabs, transpose
# to [in, out], cast to compute_dtype (bf16), pad ONLY the final layer's out
# dim to 128 (lane-dense store). Bias kept f32 (added on the f32 accumulator).
# ---------------------------------------------------------------------------
def _pad_cols(a, out_pad):
    if a.shape[1] == out_pad:
        return a
    return jnp.zeros((a.shape[0], out_pad), a.dtype).at[:, :a.shape[1]].set(a)


def prepare_params(params, input_dim, *, gamma, zeta,
                   compute_dtype=jnp.bfloat16):
    n_layers = len(params)
    prepped = []
    for li, p in enumerate(params):
        gw = gate_weight(p["weight"], p["log_alpha"], gamma=gamma, zeta=zeta)
        out_f = gw.shape[0]
        last = (li == n_layers - 1)
        out_pad = _round_up(out_f, _LANE) if last else out_f

        bias = jnp.zeros((1, out_pad), jnp.float32)
        bias = bias.at[0, :out_f].set(p["bias"].astype(jnp.float32))

        if li == 0:
            wx = _pad_cols(gw.T.astype(compute_dtype), out_pad)
            prepped.append({"wx": wx, "bias": bias})
        else:
            wx = _pad_cols(gw[:, :input_dim].T.astype(compute_dtype), out_pad)
            wh = _pad_cols(gw[:, input_dim:].T.astype(compute_dtype), out_pad)
            prepped.append({"wx": wx, "wh": wh, "bias": bias})
    return prepped


# ---------------------------------------------------------------------------
# Fused forward pass (single pallas_call)
# ---------------------------------------------------------------------------
def _forward(prepped, x, input_dim, output_dim, *, single_buffer_weights):
    B, in_f = x.shape
    assert in_f == input_dim
    n_layers = len(prepped)
    out_pad_last = prepped[-1]["wx"].shape[1]
    compute_dtype = prepped[0]["wx"].dtype

    # Batch tiling: large tiles amortize the ~0.35us per-grid-step overhead;
    # keep >=2 grid steps when the batch allows it (v7x has 2 TensorCores).
    if B <= _SUBLANE:
        TB = _round_up(B, _SUBLANE)
    else:
        TB = min(512, _round_up(-(-B // 2), _SUBLANE))
    grid = (pl.cdiv(B, TB),)

    # Resident-weight specs: constant block index; single-buffer if supported.
    buffered_cls = getattr(pl, "Buffered", None)
    use_single = single_buffer_weights and buffered_cls is not None

    def resident_spec(arr):
        if use_single:
            return pl.BlockSpec(arr.shape, lambda b: (0, 0),
                                pipeline_mode=buffered_cls(1))
        return pl.BlockSpec(arr.shape, lambda b: (0, 0))

    inputs = [x, prepped[0]["wx"], prepped[0]["bias"]]
    in_specs = [
        # x streamed at native feature width (last block dim == full array dim).
        pl.BlockSpec((TB, input_dim), lambda b: (b, 0)),
        resident_spec(prepped[0]["wx"]),
        resident_spec(prepped[0]["bias"]),
    ]
    for p in prepped[1:]:
        inputs += [p["wx"], p["wh"], p["bias"]]
        in_specs += [resident_spec(p["wx"]),
                     resident_spec(p["wh"]),
                     resident_spec(p["bias"])]

    # VMEM budget: resident weights/biases (+double buffer if not single),
    # streamed x/out blocks (double-buffered) and live f32 activation tiles.
    weight_bytes = 0
    for layer in prepped:
        for a in layer.values():
            weight_bytes += int(a.size) * a.dtype.itemsize
    max_w = max([input_dim, out_pad_last]
                + [layer["wx"].shape[1] for layer in prepped])
    act_bytes = 6 * TB * max_w * 4
    io_bytes = 2 * 2 * TB * (input_dim + out_pad_last) * 4
    needed = (1 if use_single else 2) * weight_bytes + act_bytes + io_bytes
    vmem_limit = int(min(60 * 1024 * 1024,          # stay under v7x 64 MiB
                         max(2 * needed, 32 * 1024 * 1024)))

    out_pad = pl.pallas_call(
        functools.partial(_fused_mlp_kernel, n_layers=n_layers,
                          compute_dtype=compute_dtype),
        out_shape=jax.ShapeDtypeStruct((B, out_pad_last), x.dtype),
        grid=grid,
        in_specs=in_specs,
        out_specs=pl.BlockSpec((TB, out_pad_last), lambda b: (b, 0)),
        compiler_params=pltpu.CompilerParams(
            dimension_semantics=("parallel",),
            vmem_limit_bytes=vmem_limit),
    )(*inputs)

    return out_pad[:, :output_dim]


def regularized_mlp_with_skips_forward(prepped, x, input_dim, output_dim):
    try:
        return _forward(prepped, x, input_dim, output_dim,
                        single_buffer_weights=True)
    except Exception:
        # pl.Buffered(1) single-buffering not supported on this jax/libtpu
        # build -> fall back to default double-buffered resident weights.
        return _forward(prepped, x, input_dim, output_dim,
                        single_buffer_weights=False)


# ---------------------------------------------------------------------------
# Pure-JAX reference (mirrors the PyTorch eval-mode forward)
# ---------------------------------------------------------------------------
def _ref_layer(x, p, gamma, zeta, relu):
    gates = jnp.clip(jax.nn.sigmoid(p["log_alpha"]) * (zeta - gamma) + gamma,
                     0.0, 1.0)
    y = x @ (p["weight"] * gates).T + p["bias"]
    return jnp.maximum(y, 0.0) if relu else y


def _ref_forward(params, x, gamma=-0.1, zeta=1.1):
    inp = x
    h = _ref_layer(x, params[0], gamma, zeta, True)
    for p in params[1:-1]:
        h = _ref_layer(jnp.concatenate([inp, h], axis=1), p, gamma, zeta, True)
    return _ref_layer(jnp.concatenate([inp, h], axis=1), params[-1],
                      gamma, zeta, False)


if __name__ == "__main__":
    key = jax.random.PRNGKey(0)
    k_params, k_x = jax.random.split(key)

    input_dim, hidden_dims, output_dim = 16, [32, 32], 8
    batch = 4
    gamma, zeta = -0.1, 1.1

    params = init_mlp_with_skips(k_params, input_dim, hidden_dims, output_dim)
    x = jax.random.normal(k_x, (batch, input_dim), jnp.float32)

    ref = _ref_forward(params, x, gamma, zeta)

    # 1) f32 operand path: exact-semantics check against the reference.
    prepped_f32 = prepare_params(params, input_dim, gamma=gamma, zeta=zeta,
                                 compute_dtype=jnp.float32)
    out_f32 = regularized_mlp_with_skips_forward(
        prepped_f32, x, input_dim, output_dim)
    out_f32 = jax.block_until_ready(out_f32)
    assert out_f32.shape == (batch, output_dim)
    assert jnp.allclose(out_f32, ref, atol=1e-4, rtol=1e-4), (
        float(jnp.max(jnp.abs(out_f32 - ref))))

    # 2) bf16 operand path (production default per perf review): f32 accumulate,
    #    so only operand-rounding error vs the f32 reference.
    prepped_bf16 = prepare_params(params, input_dim, gamma=gamma, zeta=zeta,
                                  compute_dtype=jnp.bfloat16)
    out_bf16 = regularized_mlp_with_skips_forward(
        prepped_bf16, x, input_dim, output_dim)
    out_bf16 = jax.block_until_ready(out_bf16)
    assert out_bf16.shape == (batch, output_dim)
    assert jnp.allclose(out_bf16, ref, atol=3e-2, rtol=3e-2), (
        float(jnp.max(jnp.abs(out_bf16 - ref))))

    print("KERNEL_OK")
</pallas_src>

<mosaic_0001>
module attributes {stable_mosaic.version = 11 : i64} {
  func.func @_gate_weight_kernel(%arg0: i32, %arg1: i32, %arg2: memref<32x128xf32, #tpu.memory_space<vmem>>, %arg3: memref<32x128xf32, #tpu.memory_space<vmem>>, %arg4: memref<32x128xf32, #tpu.memory_space<vmem>>) attributes {dimension_semantics = [#tpu.dimension_semantics<parallel>, #tpu.dimension_semantics<parallel>], iteration_bounds = array<i64: 1, 1>, scalar_prefetch = 0 : i64, scratch_operands = 0 : i64, tpu.core_type = #tpu.core_type<tc>, window_params = [{transform_indices = @transform_0, window_bounds = array<i64: 32, 128>}, {transform_indices = @transform_1, window_bounds = array<i64: 32, 128>}, {transform_indices = @transform_2, window_bounds = array<i64: 32, 128>}]} {
    %c0 = arith.constant 0 : index
    %c0_0 = arith.constant 0 : index
    %0 = vector.load %arg3[%c0, %c0_0] : memref<32x128xf32, #tpu.memory_space<vmem>>, vector<32x128xf32>
    %1 = arith.negf %0 : vector<32x128xf32>
    %2 = math.exp %1 : vector<32x128xf32>
    %cst = arith.constant 1.000000e+00 : f32
    %3 = vector.broadcast %cst : f32 to vector<32x128xf32>
    %4 = arith.addf %3, %2 : vector<32x128xf32>
    %5 = arith.divf %3, %4 : vector<32x128xf32>
    %cst_1 = arith.constant 1.200000e+00 : f32
    %6 = vector.broadcast %cst_1 : f32 to vector<32x128xf32>
    %7 = arith.mulf %5, %6 : vector<32x128xf32>
    %cst_2 = arith.constant -1.000000e-01 : f32
    %8 = vector.broadcast %cst_2 : f32 to vector<32x128xf32>
    %9 = arith.addf %7, %8 : vector<32x128xf32>
    %cst_3 = arith.constant 0.000000e+00 : f32
    %cst_4 = arith.constant 1.000000e+00 : f32
    %10 = vector.broadcast %cst_3 : f32 to vector<32x128xf32>
    %11 = arith.maximumf %10, %9 : vector<32x128xf32>
    %12 = vector.broadcast %cst_4 : f32 to vector<32x128xf32>
    %13 = arith.minimumf %12, %11 : vector<32x128xf32>
    %c0_5 = arith.constant 0 : index
    %c0_6 = arith.constant 0 : index
    %14 = vector.load %arg2[%c0_5, %c0_6] : memref<32x128xf32, #tpu.memory_space<vmem>>, vector<32x128xf32>
    %15 = arith.mulf %14, %13 : vector<32x128xf32>
    %c0_7 = arith.constant 0 : index
    %c0_8 = arith.constant 0 : index
    %16 = vector.load %arg4[%c0_7, %c0_8] : memref<32x128xf32, #tpu.memory_space<vmem>>, vector<32x128xf32>
    tpu.vector_store %arg4[%c0_7, %c0_8], %15 {strides = array<i32>} : memref<32x128xf32, #tpu.memory_space<vmem>>, vector<32x128xf32>,
    return
  }
  func.func @transform_0(%arg0: i32, %arg1: i32) -> (i32, i32) {
    %c0_i32 = arith.constant 0 : i32
    return %arg0, %arg1 : i32, i32
  }
  func.func @transform_1(%arg0: i32, %arg1: i32) -> (i32, i32) {
    %c0_i32 = arith.constant 0 : i32
    return %arg0, %arg1 : i32, i32
  }
  func.func @transform_2(%arg0: i32, %arg1: i32) -> (i32, i32) {
    %c0_i32 = arith.constant 0 : i32
    return %arg0, %arg1 : i32, i32
  }
}

</mosaic_0001>

<bundles_post_ra>
// kernel: tpu_custom_call.1
= control target key start
LH: loop header
LB: loop body
LE: loop exit
PB: predicated region body
PF: predicated region fallthrough
CT: control target
= control target key end

     0   :  { %s142_s1 = inlined_call_operand.vmem [shape: f32[32,16], index: 1, kind: input, shape index: {}]   ;;  %s143_s0 = inlined_call_operand.vmem [shape: f32[32,16], index: 0, kind: input, shape index: {}]   ;;  %s144_s2 = inlined_call_operand.vmem [shape: f32[32,16], index: 2, kind: output, shape index: {}]  }
   0x1   :  { %v11_v0 = vld [vmem:[%s142_s1] sm:$0xff]  ;;  %v12_v1 = vld [vmem:[%s142_s1 + $0x8] sm:$0xff]  ;;  %v13_v4 = vld [vmem:[%s142_s1 + $0x10] sm:$0xff] }
   0x2   :  { %v71_v2 = vmul.f32 -1.442695, %v11_v0  ;;  %v72_v3 = vmul.f32 -1.442695, %v12_v1  ;;  %v73_v5 = vmul.f32 -1.442695, %v13_v4 }
   0x3   :  { %v14_v6 = vld [vmem:[%s142_s1 + $0x18] sm:$0xff]  ;;  %v55_v28 = vld [vmem:[%s143_s0] sm:$0xff]  ;;  %v56_v32 = vld [vmem:[%s143_s0 + $0x8] sm:$0xff] }
   0x4   :  { %75 = vpow2.f32 %v71_v2  ;;  %v74_v7 = vmul.f32 -1.442695, %v14_v6  ;;  %v57_v35 = vld [vmem:[%s143_s0 + $0x10] sm:$0xff]  ;;  %v58_v39 = vld [vmem:[%s143_s0 + $0x18] sm:$0xff] }
   0x5   :  { %77 = vpow2.f32 %v72_v3 }
   0x6   :  { %79 = vpow2.f32 %v73_v5 }
   0x7   :  { %81 = vpow2.f32 %v74_v7 }
   0xe   :  { %v76_v8 = vpop.eup %75 }
   0xf   :  { %v78_v9 = vpop.eup %77  ;;  %v27_v10 = vadd.f32 1.0, %v76_v8 }
  0x10   :  { %v80_v11 = vpop.eup %79  ;;  %v28_v12 = vadd.f32 1.0, %v78_v9 }
  0x11   :  { %v82_v13 = vpop.eup %81  ;;  %83 = vrcp.f32 %v27_v10  ;;  %v29_v14 = vadd.f32 1.0, %v80_v11 }
  0x12   :  { %85 = vrcp.f32 %v28_v12  ;;  %v30_v15 = vadd.f32 1.0, %v82_v13 }
  0x13   :  { %87 = vrcp.f32 %v29_v14 }
  0x14   :  { %89 = vrcp.f32 %v30_v15 }
  0x1b   :  { %v84_v16 = vpop.eup %83 }
  0x1c   :  { %v86_v17 = vpop.eup %85  ;;  %v39_v18 = vmul.f32 1.2, %v84_v16 }
  0x1d   :  { %v88_v19 = vpop.eup %87  ;;  %v40_v20 = vmul.f32 1.2, %v86_v17 }
  0x1e   :  { %v90_v21 = vpop.eup %89  ;;  %v43_v22 = vadd.f32 -0.1, %v39_v18  ;;  %v41_v23 = vmul.f32 1.2, %v88_v19 }
  0x1f   :  { %v44_v24 = vadd.f32 -0.1, %v40_v20  ;;  %v42_v25 = vmul.f32 1.2, %v90_v21 }
  0x20   :  { %v47_v26 = vmax.f32 %v43_v22, 0.0  ;;  %v45_v27 = vadd.f32 -0.1, %v41_v23 }
  0x21   :  { %v48_v29 = vmax.f32 %v44_v24, 0.0  ;;  %v46_v30 = vadd.f32 -0.1, %v42_v25 }
  0x22   :  { %v51_v31 = vmin.f32 %v47_v26, 1.0  ;;  %v49_v33 = vmax.f32 %v45_v27, 0.0 }
  0x23   :  { %v52_v34 = vmin.f32 %v48_v29, 1.0  ;;  %v50_v36 = vmax.f32 %v46_v30, 0.0 }
  0x24   :  { %v59_v37 = vmul.f32 %v55_v28, %v51_v31  ;;  %v53_v38 = vmin.f32 %v49_v33, 1.0 }
  0x25   :  { %v60_v40 = vmul.f32 %v56_v32, %v52_v34  ;;  %v54_v41 = vmin.f32 %v50_v36, 1.0 }
  0x26   :  { %63 = vst [vmem:[%s144_s2] sm:$0xff] %v59_v37  ;;  %v61_v42 = vmul.f32 %v57_v35, %v53_v38 }
  0x27   :  { %64 = vst [vmem:[%s144_s2 + $0x8] sm:$0xff] %v60_v40  ;;  %v62_v43 = vmul.f32 %v58_v39, %v54_v41 }
  0x28   :  { %65 = vst [vmem:[%s144_s2 + $0x10] sm:$0xff] %v61_v42 }
  0x29   :  { %66 = vst [vmem:[%s144_s2 + $0x18] sm:$0xff] %v62_v43 }

</bundles_post_ra>
